<compile_context>
chip_gen: v7x
topology: tpu7x:2x2x1
jax: 0.10.0
libtpu: 0.0.40
codegen_flags: <defaults>
</compile_context>

<pallas_src>
import functools
import math

import jax
import jax.numpy as jnp
from jax import lax
from jax.experimental import pallas as pl
from jax.experimental.pallas import tpu as pltpu


_LANE = 128
_VMEM_BUDGET_BYTES = 32 * 1024 * 1024  # conservative: v7x scoped default


def _round_up(n: int, m: int) -> int:
    return ((n + m - 1) // m) * m


def prepare_strain_baseline_params(weight, bias, *, param_dtype=jnp.float32):
    """One-time parameter prep (do NOT call per forward).

    weight: (num_classes, num_features) — PyTorch nn.Linear layout.
    bias:   (num_classes,)

    Returns:
      w_t:   (num_features, Cpad) in `param_dtype`, Cpad = round_up(C, 128),
             i.e. already transposed into the MXU's (K, N) orientation.
      b_row: (1, Cpad) float32.
    """
    C, F = weight.shape
    c_pad = _round_up(max(C, 1), _LANE)
    w_t = jnp.zeros((F, c_pad), param_dtype)
    w_t = w_t.at[:, :C].set(jnp.asarray(weight).T.astype(param_dtype))
    b_row = jnp.zeros((1, c_pad), jnp.float32)
    b_row = b_row.at[0, :C].set(jnp.asarray(bias).astype(jnp.float32))
    return w_t, b_row


def _linear_kernel(x_ref, w_ref, b_ref, y_ref, nan_ref, *, batch, block_rows):
    # x_ref:   (tb, F)      -- one batch tile (pipelined, double-buffered)
    # w_ref:   (F, Cpad)    -- whole weight, VMEM-resident (single buffer)
    # b_ref:   (1, Cpad)    -- whole bias, VMEM-resident (single buffer)
    # y_ref:   (tb, Cpad)   -- lane-dense output tile
    # nan_ref: (1, 1) i32   -- per-tile NaN flag (SMEM scalar)
    x = x_ref[...]

    # MXU matmul in the weight's dtype (f32 or bf16), f32 accumulation,
    # natural (M,K)x(K,N) orientation -> no in-kernel transpose.
    y = lax.dot_general(
        x.astype(w_ref.dtype), w_ref[...],
        dimension_numbers=(((1,), (0,)), ((), ())),
        preferred_element_type=jnp.float32,
    )
    y_ref[...] = (y + b_ref[...]).astype(y_ref.dtype)

    # (input != input).any() for this tile (VPU/XLU, off the MXU path).
    isnan = x != x
    if batch % block_rows != 0:
        # Ragged last tile: mask rows past the true batch so unspecified
        # out-of-bounds data can't trip the flag.
        row = (pl.program_id(0) * block_rows
               + lax.broadcasted_iota(jnp.int32, (block_rows, 1), 0))
        isnan = jnp.logical_and(isnan, row < batch)
    nan_ref[0, 0] = jnp.max(isnan.astype(jnp.int32))


@functools.partial(jax.jit, static_argnames=("num_classes", "block_b"))
def strain_baseline_forward(x, w_t, b_row, *, num_classes, block_b=256):
    """Equivalent of StrainBaseline.forward.

    x:     (B, num_features) float32
    w_t:   (num_features, Cpad) — from prepare_strain_baseline_params
    b_row: (1, Cpad) float32    — from prepare_strain_baseline_params

    Returns (y, nan_flag):
      y:        (B, num_classes) float32
      nan_flag: () bool — True iff the input contains NaN ("null exists").
                Returned (not printed) so the forward stays jittable with no
                host sync; the caller decides when to look at it.
    """
    assert block_b % 8 == 0
    B, F = x.shape
    Fw, c_pad = w_t.shape
    assert Fw == F and c_pad % _LANE == 0 and num_classes <= c_pad

    # ---- batch tile selection (no padding of x) ----
    if B <= block_b:
        tb = B  # full-extent block: allowed even if B is not a multiple of 8
        # Give v7x's second TensorCore work when alignment allows.
        if B >= 16 and B % 16 == 0:
            tb = B // 2
    else:
        tb = block_b

    # Shrink the batch tile if the VMEM footprint would blow the budget
    # (weight + bias resident once; x/y tiles double-buffered by the pipeline).
    w_bytes = F * c_pad * w_t.dtype.itemsize
    b_bytes = c_pad * 4
    x_item = x.dtype.itemsize

    def _tile_bytes(t):
        return 2 * t * (F * x_item + c_pad * 4)

    while tb > 8 and tb % 16 == 0 and (
            w_bytes + b_bytes + _tile_bytes(tb) > _VMEM_BUDGET_BYTES):
        tb //= 2

    n_tiles = pl.cdiv(B, tb)
    vmem_need = w_bytes + b_bytes + _tile_bytes(tb)
    vmem_limit = int(min(64 * 1024 * 1024,
                         max(vmem_need + (4 << 20), 16 * 1024 * 1024)))

    cost = pl.CostEstimate(
        flops=2 * B * F * c_pad,
        bytes_accessed=B * F * x_item + w_bytes + b_bytes + B * c_pad * 4,
        transcendentals=0,
    )

    kernel = functools.partial(_linear_kernel, batch=B, block_rows=tb)

    y_pad, nan_tiles = pl.pallas_call(
        kernel,
        grid=(n_tiles,),
        in_specs=[
            pl.BlockSpec((tb, F), lambda i: (i, 0)),        # x tile (pipelined)
            pl.BlockSpec(memory_space=pltpu.VMEM),          # weight, resident once
            pl.BlockSpec(memory_space=pltpu.VMEM),          # bias, resident once
        ],
        out_specs=(
            pl.BlockSpec((tb, c_pad), lambda i: (i, 0)),    # y tile (lane-dense)
            pl.BlockSpec((1, 1), lambda i: (i, 0),
                         memory_space=pltpu.SMEM),          # per-tile NaN flag
        ),
        out_shape=(
            jax.ShapeDtypeStruct((B, c_pad), jnp.float32),
            jax.ShapeDtypeStruct((n_tiles, 1), jnp.int32),
        ),
        compiler_params=pltpu.CompilerParams(
            dimension_semantics=("parallel",),   # batch tiles -> both v7x TCs
            vmem_limit_bytes=vmem_limit,
        ),
        cost_estimate=cost,
    )(x, w_t, b_row)

    # Module semantics require (B, num_classes). For tiny C this slice is an
    # extra HBM pass; consumers that can work on the lane-padded (B, Cpad)
    # slab should take y_pad directly instead.
    y = y_pad[:, :num_classes]
    nan_flag = jnp.max(nan_tiles) > 0
    return y, nan_flag


if __name__ == "__main__":
    key = jax.random.PRNGKey(0)
    k_x, k_w, k_b = jax.random.split(key, 3)

    batch = 8
    num_features = 32
    num_classes = 5

    # Deterministic init mimicking nn.Linear's uniform(-1/sqrt(F), 1/sqrt(F)).
    bound = 1.0 / math.sqrt(num_features)
    weight = jax.random.uniform(
        k_w, (num_classes, num_features), jnp.float32, -bound, bound)
    bias = jax.random.uniform(
        k_b, (num_classes,), jnp.float32, -bound, bound)
    x = jax.random.normal(k_x, (batch, num_features), jnp.float32)

    # One-time parameter prep (transpose + lane-pad), outside the hot path.
    # For bf16 MXU inputs on v6e/v7x: param_dtype=jnp.bfloat16 (looser tol).
    w_t, b_row = prepare_strain_baseline_params(weight, bias)

    y, nan_flag = strain_baseline_forward(x, w_t, b_row, num_classes=num_classes)
    jax.block_until_ready((y, nan_flag))

    # Caller-side equivalent of the module's `print('null exists')`.
    if bool(nan_flag):
        print('null exists')

    # Sanity-check against plain JAX reference.
    y_ref = x @ weight.T + bias
    assert jnp.allclose(y, y_ref, atol=1e-5, rtol=1e-5)
    assert not bool(nan_flag)

    # Exercise the NaN-detection path once (same shapes -> no recompile).
    x_nan = x.at[0, 0].set(jnp.nan)
    y2, nan_flag2 = strain_baseline_forward(
        x_nan, w_t, b_row, num_classes=num_classes)
    jax.block_until_ready((y2, nan_flag2))
    assert bool(nan_flag2)

    print("KERNEL_OK")
</pallas_src>

<mosaic_0001>
module attributes {stable_mosaic.version = 11 : i64} {
  func.func @_linear_kernel(%arg0: i32, %arg1: memref<8x32xf32, #tpu.memory_space<vmem>>, %arg2: memref<32x128xf32, #tpu.memory_space<vmem>>, %arg3: memref<1x128xf32, #tpu.memory_space<vmem>>, %arg4: memref<8x128xf32, #tpu.memory_space<vmem>>, %arg5: memref<1x1xi32, #tpu.memory_space<smem>>) attributes {dimension_semantics = [#tpu.dimension_semantics<parallel>], iteration_bounds = array<i64: 1>, scalar_prefetch = 0 : i64, scratch_operands = 0 : i64, tpu.core_type = #tpu.core_type<tc>, window_params = [{transform_indices = @transform_0, window_bounds = array<i64: 8, 32>}, {pipeline_mode = #tpu.pipeline_mode<synchronous>, transform_indices = @transform_1, window_bounds = array<i64: 32, 128>}, {pipeline_mode = #tpu.pipeline_mode<synchronous>, transform_indices = @transform_2, window_bounds = array<i64: 1, 128>}, {transform_indices = @transform_3, window_bounds = array<i64: 8, 128>}, {transform_indices = @transform_4, window_bounds = array<i64: 1, 1>}]} {
    %c0 = arith.constant 0 : index
    %c0_0 = arith.constant 0 : index
    %0 = vector.load %arg1[%c0, %c0_0] : memref<8x32xf32, #tpu.memory_space<vmem>>, vector<8x32xf32>
    %c0_1 = arith.constant 0 : index
    %c0_2 = arith.constant 0 : index
    %1 = vector.load %arg2[%c0_1, %c0_2] : memref<32x128xf32, #tpu.memory_space<vmem>>, vector<32x128xf32>
    %cst = arith.constant dense<0.000000e+00> : vector<8x128xf32>
    %2 = tpu.matmul %0, %1, %cst {dimension_numbers = #tpu.dot_dimension_numbers<[1], [0], [0], [1], [0, 0, 1, 1], [], []>} : vector<8x32xf32>, vector<32x128xf32>, vector<8x128xf32> -> vector<8x128xf32>
    %c0_3 = arith.constant 0 : index
    %c0_4 = arith.constant 0 : index
    %3 = vector.load %arg3[%c0_3, %c0_4] : memref<1x128xf32, #tpu.memory_space<vmem>>, vector<1x128xf32>
    %4 = vector.broadcast %3 : vector<1x128xf32> to vector<8x128xf32>
    %5 = arith.addf %2, %4 : vector<8x128xf32>
    %c0_5 = arith.constant 0 : index
    %c0_6 = arith.constant 0 : index
    %6 = vector.load %arg4[%c0_5, %c0_6] : memref<8x128xf32, #tpu.memory_space<vmem>>, vector<8x128xf32>
    tpu.vector_store %arg4[%c0_5, %c0_6], %5 {strides = array<i32>} : memref<8x128xf32, #tpu.memory_space<vmem>>, vector<8x128xf32>,
    %7 = arith.cmpf one, %0, %0 : vector<8x32xf32>
    %8 = arith.extui %7 : vector<8x32xi1> to vector<8x32xi32>
    %9 = vector.shape_cast %8 : vector<8x32xi32> to vector<1x8x32xi32>
    %cst_7 = arith.constant dense<-2147483648> : vector<1xi32>
    %10 = vector.multi_reduction <maxsi>, %9, %cst_7 [1, 2] : vector<1x8x32xi32> to vector<1xi32>
    %11 = vector.shape_cast %10 : vector<1xi32> to vector<1x1x1xi32>
    %12 = vector.extract %11[0, 0, 0] : i32 from vector<1x1x1xi32>
    %c0_8 = arith.constant 0 : index
    %c0_9 = arith.constant 0 : index
    %13 = memref.load %arg5[%c0_8, %c0_9] : memref<1x1xi32, #tpu.memory_space<smem>>
    memref.store %12, %arg5[%c0_8, %c0_9] : memref<1x1xi32, #tpu.memory_space<smem>>
    return
  }
  func.func @transform_0(%arg0: i32) -> (i32, i32) {
    %c0_i32 = arith.constant 0 : i32
    %c0_i32_0 = arith.constant 0 : i32
    return %arg0, %c0_i32 : i32, i32
  }
  func.func @transform_1(%arg0: i32) -> (i32, i32) {
    %c0_i32 = arith.constant 0 : i32
    %c0_i32_0 = arith.constant 0 : i32
    %c0_i32_1 = arith.constant 0 : i32
    return %c0_i32, %c0_i32_0 : i32, i32
  }
  func.func @transform_2(%arg0: i32) -> (i32, i32) {
    %c0_i32 = arith.constant 0 : i32
    %c0_i32_0 = arith.constant 0 : i32
    %c0_i32_1 = arith.constant 0 : i32
    return %c0_i32, %c0_i32_0 : i32, i32
  }
  func.func @transform_3(%arg0: i32) -> (i32, i32) {
    %c0_i32 = arith.constant 0 : i32
    %c0_i32_0 = arith.constant 0 : i32
    return %arg0, %c0_i32 : i32, i32
  }
  func.func @transform_4(%arg0: i32) -> (i32, i32) {
    %c0_i32 = arith.constant 0 : i32
    %c0_i32_0 = arith.constant 0 : i32
    return %arg0, %c0_i32 : i32, i32
  }
}

</mosaic_0001>

<bundles_post_ra>
// kernel: strain_baseline_forward.1
= control target key start
LH: loop header
LB: loop body
LE: loop exit
PB: predicated region body
PF: predicated region fallthrough
CT: control target
= control target key end

     0   :  { %10 = vsyncpa [#allocation3], 0  ;;  %s441_s0 = inlined_call_operand.hbm [shape: f32[8,32], index: 0, kind: input, shape index: {}]   ;;  %s442_s1 = inlined_call_operand.hbm [shape: f32[32,128], index: 1, kind: input, shape index: {}]   ;;  %s443_s2 = inlined_call_operand.hbm [shape: f32[1,128], index: 2, kind: input, shape index: {}]   ;;  %s444_s3 = inlined_call_operand.hbm [shape: f32[8,128], index: 3, kind: output, shape index: {0}]   ;;  %s445_s4 = inlined_call_operand.hbm [shape: s32[1,1], index: 4, kind: output, shape index: {1}]  }
   0x1   :  { %11 = vsyncpa [#allocation7], 0 }
   0x2   :  { %12 = vsyncpa [#allocation4], 0 }
   0x3   :  { %13 = vsyncpa [#allocation5], 0  ;;  %s343_s15 = smov [#allocation6]   ;;  %s237_s19 = scalar_lea.hbm %s442_s1, 512 }
   0x4   :  { %s29_s16 = sshll.u32 %s343_s15, 4  ;;  %p238_p0 = scmp.ne.s32.totalorder %s442_s1, %s237_s19  ;;  %s30_s16 = int_to_ptr.vmem [resolvable:$true] %s29_s16 }
   0x5   :  { %p241_p1 = scmp.lt.u32.totalorder %s237_s19, %s442_s1 }
   0x7   :  { %p243_p2 = pnand %p241_p1, %p238_p0 }
   0x9   :  { %246 = shalt.err (!%p243_p2)
}
   0xa   :  { %s247_s24 = scalar_lea.vmem %s30_s16, 512  ;;  %p252_p4 = scmp.lt.s32.totalorder %s30_s16, %s30_s16 }
   0xb   :  { %p248_p3 = scmp.ne.s32.totalorder %s30_s16, %s247_s24  ;;  %p253_p5 = scmp.lt.s32.totalorder %s247_s24, %s247_s24 }
   0xd   :  { %p254_p6 = por %p253_p5, %p252_p4 }
   0xf   :  { %p255_p7 = pnand %p254_p6, %p248_p3 }
  0x11   :  { %258 = shalt.err (!%p255_p7)
}
  0x12   :  { %s344_s25 = smov 128   ;;  %s345_s26 = smov 8  }
  0x13   :  { %35 = dma.hbm_to_vmem [thread:$0]  %s442_s1, 512, %s30_s16, [#allocation7], %s344_s25, %s344_s25, %s345_s26  }
  0x14   :  { %s346_s29 = smov [#allocation2]   ;;  %s347_s5 = smov [#allocation8]  }
  0x15   :  { %s20_s30 = sshll.u32 %s346_s29, 4  ;;  %s42_s6 = sshll.u32 %s347_s5, 4  ;;  %s21_s30 = int_to_ptr.vmem [resolvable:$true] %s20_s30  ;;  %s43_s6 = int_to_ptr.vmem [resolvable:$true] %s42_s6 }
  0x16   :  { %s259_s9 = scalar_lea.hbm %s441_s0, 128 }
  0x17   :  { %p260_p8 = scmp.ne.s32.totalorder %s441_s0, %s259_s9  ;;  %p263_p9 = scmp.lt.u32.totalorder %s259_s9, %s441_s0 }
  0x19   :  { %p265_p10 = pnand %p263_p9, %p260_p8 }
  0x1b   :  { %268 = shalt.err (!%p265_p10)
}
  0x1c   :  { %s269_s1 = scalar_lea.vmem %s21_s30, 128  ;;  %p274_p12 = scmp.lt.s32.totalorder %s21_s30, %s21_s30 }
  0x1d   :  { %p270_p11 = scmp.ne.s32.totalorder %s21_s30, %s269_s1  ;;  %p275_p13 = scmp.lt.s32.totalorder %s269_s1, %s269_s1 }
  0x1f   :  { %p276_p0 = por %p275_p13, %p274_p12 }
  0x21   :  { %p277_p1 = pnand %p276_p0, %p270_p11 }
  0x23   :  { %280 = shalt.err (!%p277_p1)
}
  0x24   :  { %23 = dma.hbm_to_vmem [thread:$0]  %s441_s0, 128, %s21_s30, [#allocation3]  }
  0x25   :  { %s281_s18 = scalar_lea.hbm %s443_s2, 16 }
  0x26   :  { %p282_p2 = scmp.ne.s32.totalorder %s443_s2, %s281_s18  ;;  %p285_p3 = scmp.lt.u32.totalorder %s281_s18, %s443_s2 }
  0x28   :  { %p287_p4 = pnand %p285_p3, %p282_p2 }
  0x2a   :  { %290 = shalt.err (!%p287_p4)
}
  0x2b   :  { %s291_s23 = scalar_lea.vmem %s43_s6, 16  ;;  %s295_s24 = scalar_lea.vmem %s43_s6, 32 }
  0x2c   :  { %p292_p5 = scmp.ne.s32.totalorder %s43_s6, %s291_s23  ;;  %p296_p6 = scmp.lt.s32.totalorder %s43_s6, %s43_s6 }
  0x2d   :  { %p297_p7 = scmp.lt.s32.totalorder %s295_s24, %s291_s23 }
  0x2f   :  { %p298_p8 = por %p297_p7, %p296_p6 }
  0x31   :  { %p299_p9 = pnand %p298_p8, %p292_p5 }
  0x33   :  { %302 = shalt.err (!%p299_p9)
}
  0x34   :  { %45 = dma.hbm_to_vmem [thread:$0]  %s443_s2, 16, %s43_s6, [#allocation7]  }
  0x35   :  { %335 = dma.done.wait [#allocation3], 128  }
  0x36   :  { %336 = vsyncadd [#allocation3], 4294967168 }
  0x37   :  { %337 = dma.done.wait [#allocation7], 528  }
  0x38   :  { %338 = vsyncadd [#allocation7], 4294966768  ;;  %v348_v0 = vmov 0.0|0.0   ;;  %vm349_vm0 = vmmov 0   ;;  %v350_v1 = vmov 0.0   ;;  %v55_v2 = vld [vmem:[#allocation2] sm:$0xff] }
  0x39   :  { %218 = vmatprep.subr.bf16.mxu0 %v348_v0  ;;  %215 = vmatprep.mubr.msk.f32.mxu0 %vm349_vm0, %v350_v1  ;;  %vm67_vm1 = vcmask 261120   ;;  %v56_v3 = vld [vmem:[#allocation6] sm:$0xff]  ;;  %v57_v4 = vld [vmem:[#allocation6 + $0x8] sm:$0xff]  ;;  %vm142_vm2 = vcmp.ne.f32.partialorder %v55_v2, %v55_v2  ;;  %v58_v6 = vld [vmem:[#allocation6 + $0x10] sm:$0xff]  ;;  %v351_v8 = vmov 0   ;;  %s352_s2 = smov [#allocation9]  }
  0x3a   :  { %v219_v5 = vpack.c.bf16 %v57_v4, %v56_v3  ;;  %v59_v7 = vld [vmem:[#allocation6 + $0x18] sm:$0xff]  ;;  %v143_v9 = vsel %vm142_vm2, 1, %v351_v8  ;;  %v200_v18 = vld [vmem:[#allocation8] ss:$0 sm:$0xff]  ;;  %s177_s26 = sshll.u32 %s352_s2, 4  ;;  %s178_s26 = int_to_ptr.vmem [resolvable:$true] %s177_s26 }
  0x3b   :  { %v144_v10 = vsel %vm67_vm1, %v143_v9, 2147483648  ;;  %v222_v11 = vpack.c.bf16 %v59_v7, %v58_v6  ;;  %s303_s27 = scalar_lea.vmem %s178_s26, 128  ;;  %p308_p11 = scmp.lt.s32.totalorder %s178_s26, %s178_s26 }
  0x3c   :  { %220 = vmatpush3.bf16.msra.mxu0 %v219_v5  ;;  %v146_v12 = vshra.s32 %v144_v10, 16  ;;  %v145_v14 = vand.u32 65535, %v144_v10  ;;  %p304_p10 = scmp.ne.s32.totalorder %s178_s26, %s303_s27  ;;  %p309_p12 = scmp.lt.s32.totalorder %s303_s27, %s303_s27 }
  0x3d   :  { %221 = vmatprep.subr.bf16.mxu0 %v348_v0 }
  0x3e   :  { %v148_v13 = vcvt.s32.f32 %v146_v12  ;;  %v147_v15 = vcvt.s32.f32 %v145_v14  ;;  %p310_p13 = por %p309_p12, %p308_p11 }
  0x40   :  { %223 = vmatpush3.bf16.msra.mxu0 %v222_v11  ;;  %149 = vmax.xlane.f32.xlu0 %v148_v13  ;;  %p311_p0 = pnand %p310_p13, %p304_p10 }
  0x43   :  { %216 = vmatmul.mubr.msk.f32.vlgmr.msra.gmra.mrb[0].mxu0 %vm67_vm1, %v55_v2 }
  0xcd   :  { %v150_v16 = vpop.xlane.xlu0 %149 }
  0xce   :  { %vm151_vm3 = vcmp.eq.f32.partialorder %v148_v13, %v150_v16 }
  0xcf   :  { %v152_v17 = vsel %vm151_vm3, %v147_v15, -inf }
  0xd0   :  { %153 = vmax.xlane.f32.xlu0 %v152_v17 }
 0x116   :  { %v137_v19 = vpop.f32.mrb[0].mxu0 }
 0x117   :  { %v138_v20 = vadd.f32 %v200_v18, %v137_v19  ;;  %v217_v21 = vpop.f32.mrb[1].mxu0 }
 0x119   :  { %141 = vst [vmem:[#allocation9] sm:$0xff] %v138_v20 }
 0x11a   :  { %314 = shalt.err (!%p311_p0)
}
 0x11b   :  { %s315_s30 = scalar_lea.hbm %s444_s3, 128 }
 0x11c   :  { %p316_p1 = scmp.ne.s32.totalorder %s444_s3, %s315_s30  ;;  %p319_p2 = scmp.lt.u32.totalorder %s315_s30, %s444_s3 }
 0x11e   :  { %p321_p3 = pnand %p319_p2, %p316_p1 }
 0x120   :  { %324 = shalt.err (!%p321_p3)
}
 0x121   :  { %180 = dma.vmem_to_hbm [thread:$0]  %s178_s26, 128, %s444_s3, [#allocation4]   ;;  %v156_v22 = vcvt.f32.s32 %v150_v16 }
 0x122   :  { %s325_s3 = scalar_lea.hbm %s445_s4, 16 }
 0x123   :  { %v157_v24 = vshll.u32 %v156_v22, 16  ;;  %p326_p4 = scmp.ne.s32.totalorder %s445_s4, %s325_s3  ;;  %p329_p5 = scmp.lt.u32.totalorder %s325_s3, %s445_s4 }
 0x125   :  { %p331_p6 = pnand %p329_p5, %p326_p4 }
 0x15d   :  { %v154_v23 = vpop.xlane.xlu0 %153 }
 0x15e   :  { %v155_v25 = vcvt.f32.s32 %v154_v23 }
 0x160   :  { %v158_v26 = vadd.s32 %v157_v24, %v155_v25 }
 0x162   :  { %v159_v27 = vrot.slane %v158_v26, 4 }
 0x164   :  { %vm160_vm4 = vcmp.gt.s32.totalorder %v158_v26, %v159_v27 }
 0x165   :  { %v161_v28 = vsel %vm160_vm4, %v158_v26, %v159_v27 }
 0x166   :  { %v162_v29 = vrot.slane %v161_v28, 2 }
 0x168   :  { %vm163_vm5 = vcmp.gt.s32.totalorder %v161_v28, %v162_v29 }
 0x169   :  { %v164_v30 = vsel %vm163_vm5, %v161_v28, %v162_v29 }
 0x16a   :  { %v165_v31 = vrot.slane %v164_v30, 1 }
 0x16c   :  { %vm166_vm6 = vcmp.gt.s32.totalorder %v164_v30, %v165_v31 }
 0x16d   :  { %v167_v32 = vsel %vm166_vm6, %v164_v30, %v165_v31 }
 0x16e   :  { %224 = vpush %v167_v32 }
 0x19f   :  { %s225_s11 = spop %224 }
 0x1a0   :  { %170 = sst [smem:[#allocation10]] %s225_s11 }
 0x1a1   :  { %334 = shalt.err (!%p331_p6)
}
 0x1a2   :  { %s353_s17 = smov [#allocation10]  }
 0x1a3   :  { %188 = dma.smem_to_hbm %s353_s17, 16, %s445_s4, [#allocation5]  }
 0x1a4   :  { %339 = dma.done.wait [#allocation4], 128  }
 0x1a5   :  { %340 = vsyncadd [#allocation4], 4294967168 }
 0x1a6   :  { %341 = dma.done.wait [#allocation5], 16  }
 0x1a7   :  { %342 = vsyncadd [#allocation5], 4294967280 }
 0x1a8   :  { %195 = sfence }
 0x1a9   :  { %196 = vsyncpa [#allocation3], 1 }
 0x1aa   :  { %197 = vsyncpa [#allocation7], 1 }
 0x1ab   :  { %198 = vsyncpa [#allocation4], 1 }
 0x1ac   :  { %199 = vsyncpa [#allocation5], 1 }

</bundles_post_ra>
